<compile_context>
chip_gen: v7x
topology: tpu7x:2x2x1
jax: 0.10.0
libtpu: 0.0.40
codegen_flags: <defaults>
</compile_context>

<pallas_src>
import jax
import jax.numpy as jnp
from jax.experimental import pallas as pl
from jax.experimental.pallas import tpu as pltpu

_LANE = 128


def _make_dice_kernel(ts, inner, s_rows, ragged):
    """Build the per-tile reduction kernel (ts, inner, s_rows are trace-time)."""

    def kernel(p_ref, t_ref, inter_ref, marg_ref):
        # p_ref, t_ref       : (1, ts, 128) tile of one sample's flattened data
        # inter_ref, marg_ref: (1, 1, 1, 128) per-(sample, chunk) lane partials,
        #                      resident across the reduction (last grid) axis.
        c = pl.program_id(1)   # chunk index (parallel split of the reduction)
        i = pl.program_id(2)   # tile index within the chunk (reduction axis)

        @pl.when(i == 0)
        def _():
            inter_ref[...] = jnp.zeros_like(inter_ref)
            marg_ref[...] = jnp.zeros_like(marg_ref)

        p = p_ref[0].astype(jnp.float32)   # (ts, 128) — accumulate in f32
        t = t_ref[0].astype(jnp.float32)   # (ts, 128)

        if ragged:
            # The last tile of the reduction may extend past s_rows; its
            # out-of-bounds rows hold undefined data, so zero them out.
            # (Select, not multiply, so garbage NaN/Inf cannot leak through.)
            row0 = (c * inner + i) * ts
            rows = jax.lax.broadcasted_iota(jnp.int32, (ts, _LANE), 0)
            valid = rows < (s_rows - row0)
            p = jnp.where(valid, p, 0.0)
            t = jnp.where(valid, t, 0.0)

        inter_ref[...] += jnp.sum(p * t, axis=0, keepdims=True)[None, None]
        marg_ref[...] += jnp.sum(p + t, axis=0, keepdims=True)[None, None]

    return kernel


def soft_dice_loss(probs, targets, smooth=1.0, *,
                   single_tile_max_rows=2048, multi_tile_rows=1024):
    """Soft dice loss; probs/targets are (N, ...) with identical element count."""
    num = probs.shape[0]
    m1 = probs.reshape(num, -1)     # dtype preserved — bf16 streams as bf16
    m2 = targets.reshape(num, -1)
    d = m1.shape[1]

    s_rows = pl.cdiv(d, _LANE)
    d_lane = s_rows * _LANE
    if d_lane != d:
        # Pad only to a 128-lane multiple (needed for the (N, S, 128) view)
        # and only when strictly necessary.  Zero padding is sum-neutral.
        m1 = jnp.pad(m1, ((0, 0), (0, d_lane - d)))
        m2 = jnp.pad(m2, ((0, 0), (0, d_lane - d)))
    m1 = m1.reshape(num, s_rows, _LANE)
    m2 = m2.reshape(num, s_rows, _LANE)

    # ---- tile / grid selection -------------------------------------------
    if s_rows <= single_tile_max_rows:
        ts = s_rows                    # one block == full sample -> always legal
    else:
        ts = multi_tile_rows           # multiple of 16: legal for f32 and bf16
    n_tiles = pl.cdiv(s_rows, ts)
    ragged = (s_rows % ts) != 0        # last tile partially out-of-bounds

    # Split the reduction into 2 "parallel" chunks when the batch alone is too
    # small to feed both v7x TensorCores (neutral on single-core v5e/v6e).
    n_chunks = 2 if (num < 4 and n_tiles >= 4 and n_tiles % 2 == 0) else 1
    inner = n_tiles // n_chunks

    in_kwargs = {}
    if n_tiles > 1 and hasattr(pl, "Buffered"):
        # Near-zero compute per tile: deepen input pipelining to hide the DMA
        # issue latency of consecutive tiles.  VMEM cost stays in the low MiB.
        in_kwargs["pipeline_mode"] = pl.Buffered(3)

    in_spec = pl.BlockSpec((1, ts, _LANE),
                           lambda b, c, i: (b, c * inner + i, 0),
                           **in_kwargs)
    out_spec = pl.BlockSpec((1, 1, 1, _LANE), lambda b, c, i: (b, c, 0, 0))
    out_shape = [jax.ShapeDtypeStruct((num, n_chunks, 1, _LANE), jnp.float32)] * 2

    inter, marg = pl.pallas_call(
        _make_dice_kernel(ts, inner, s_rows, ragged),
        out_shape=out_shape,
        grid_spec=pltpu.PrefetchScalarGridSpec(
            num_scalar_prefetch=0,
            grid=(num, n_chunks, inner),
            in_specs=[in_spec, in_spec],
            out_specs=[out_spec, out_spec],
        ),
        compiler_params=pltpu.CompilerParams(
            dimension_semantics=("parallel", "parallel", "arbitrary")),
    )(m1, m2)

    # Tiny epilogue: fold chunk partials + 128 lanes, then the dice formula.
    intersection = inter.sum(axis=(1, 2, 3))     # (N,)  == sum(m1 * m2)
    marginal = marg.sum(axis=(1, 2, 3))          # (N,)  == sum(m1) + sum(m2)
    score = 2.0 * (intersection + smooth) / (marginal + smooth)
    return 1.0 - score.sum() / num


def _soft_dice_loss_ref(probs, targets, smooth=1.0):
    num = probs.shape[0]
    m1 = probs.reshape(num, -1).astype(jnp.float32)
    m2 = targets.reshape(num, -1).astype(jnp.float32)
    inter = (m1 * m2).sum(1)
    score = 2.0 * (inter + smooth) / (m1.sum(1) + m2.sum(1) + smooth)
    return 1.0 - score.sum() / num


def _check(probs, targets, atol=1e-5, **kw):
    out = soft_dice_loss(probs, targets, **kw)
    jax.block_until_ready(out)
    ref = _soft_dice_loss_ref(probs, targets)
    assert jnp.allclose(out, ref, atol=atol, rtol=atol), (out, ref)


if __name__ == "__main__":
    key = jax.random.PRNGKey(0)
    k1, k2, k3, k4, k5, k6 = jax.random.split(key, 6)

    # Primary case: NCHW segmentation-style inputs, single-tile fast path.
    probs = jax.nn.sigmoid(jax.random.normal(k1, (2, 4, 16, 16), jnp.float32))
    targets = (jax.random.uniform(k2, (2, 4, 16, 16)) > 0.5).astype(jnp.float32)
    _check(probs, targets)

    # bf16 streaming path (inputs are NOT upcast in the wrapper).
    _check(probs.astype(jnp.bfloat16), targets.astype(jnp.bfloat16), atol=1e-4)

    # Multi-tile reduction + 2-chunk parallel split + Buffered(3), exercised at
    # a small shape by overriding the tile-size knobs.
    p_b = jax.nn.sigmoid(jax.random.normal(k3, (2, 8, 16, 32), jnp.float32))
    t_b = (jax.random.uniform(k4, (2, 8, 16, 32)) > 0.5).astype(jnp.float32)
    _check(p_b, t_b, atol=1e-4, single_tile_max_rows=8, multi_tile_rows=8)

    # Ragged shapes: minimal lane padding + masked (out-of-bounds) last tile.
    p_c = jax.nn.sigmoid(jax.random.normal(k5, (2, 5, 18, 16), jnp.float32))
    t_c = (jax.random.uniform(k6, (2, 5, 18, 16)) > 0.5).astype(jnp.float32)
    _check(p_c, t_c, atol=1e-4, single_tile_max_rows=8, multi_tile_rows=8)

    print("KERNEL_OK")
</pallas_src>

<mosaic_0001>
module attributes {stable_mosaic.version = 11 : i64} {
  func.func @kernel(%arg0: i32, %arg1: i32, %arg2: i32, %arg3: memref<1x8x128xf32, #tpu.memory_space<vmem>>, %arg4: memref<1x8x128xf32, #tpu.memory_space<vmem>>, %arg5: memref<1x1x1x128xf32, #tpu.memory_space<vmem>>, %arg6: memref<1x1x1x128xf32, #tpu.memory_space<vmem>>) attributes {dimension_semantics = [#tpu.dimension_semantics<parallel>, #tpu.dimension_semantics<parallel>, #tpu.dimension_semantics<arbitrary>], iteration_bounds = array<i64: 2, 1, 1>, scalar_prefetch = 0 : i64, scratch_operands = 0 : i64, tpu.core_type = #tpu.core_type<tc>, window_params = [{transform_indices = @transform_0, window_bounds = array<i64: 1, 8, 128>}, {transform_indices = @transform_1, window_bounds = array<i64: 1, 8, 128>}, {transform_indices = @transform_2, window_bounds = array<i64: 1, 1, 1, 128>}, {transform_indices = @transform_3, window_bounds = array<i64: 1, 1, 1, 128>}]} {
    %c0_i32 = arith.constant 0 : i32
    %0 = arith.cmpi eq, %arg2, %c0_i32 : i32
    %1 = arith.extui %0 : i1 to i32
    %c0_i32_0 = arith.constant 0 : i32
    %2 = arith.cmpi ne, %1, %c0_i32_0 : i32
    scf.if %2 {
      %cst_23 = arith.constant 0.000000e+00 : f32
      %21 = vector.broadcast %cst_23 : f32 to vector<1x1x1x128xf32>
      %c0_24 = arith.constant 0 : index
      %c0_25 = arith.constant 0 : index
      %c0_26 = arith.constant 0 : index
      %c0_27 = arith.constant 0 : index
      %22 = vector.load %arg5[%c0_24, %c0_25, %c0_26, %c0_27] : memref<1x1x1x128xf32, #tpu.memory_space<vmem>>, vector<1x1x1x128xf32>
      tpu.vector_store %arg5[%c0_24, %c0_25, %c0_26, %c0_27], %21 {strides = array<i32>} : memref<1x1x1x128xf32, #tpu.memory_space<vmem>>, vector<1x1x1x128xf32>,
      %cst_28 = arith.constant 0.000000e+00 : f32
      %23 = vector.broadcast %cst_28 : f32 to vector<1x1x1x128xf32>
      %c0_29 = arith.constant 0 : index
      %c0_30 = arith.constant 0 : index
      %c0_31 = arith.constant 0 : index
      %c0_32 = arith.constant 0 : index
      %24 = vector.load %arg6[%c0_29, %c0_30, %c0_31, %c0_32] : memref<1x1x1x128xf32, #tpu.memory_space<vmem>>, vector<1x1x1x128xf32>
      tpu.vector_store %arg6[%c0_29, %c0_30, %c0_31, %c0_32], %23 {strides = array<i32>} : memref<1x1x1x128xf32, #tpu.memory_space<vmem>>, vector<1x1x1x128xf32>,
    } else {
    }
    %c0 = arith.constant 0 : index
    %c0_1 = arith.constant 0 : index
    %c0_2 = arith.constant 0 : index
    %3 = vector.load %arg3[%c0, %c0_1, %c0_2] : memref<1x8x128xf32, #tpu.memory_space<vmem>>, vector<1x8x128xf32>
    %4 = vector.shape_cast %3 : vector<1x8x128xf32> to vector<8x128xf32>
    %c0_3 = arith.constant 0 : index
    %c0_4 = arith.constant 0 : index
    %c0_5 = arith.constant 0 : index
    %5 = vector.load %arg4[%c0_3, %c0_4, %c0_5] : memref<1x8x128xf32, #tpu.memory_space<vmem>>, vector<1x8x128xf32>
    %6 = vector.shape_cast %5 : vector<1x8x128xf32> to vector<8x128xf32>
    %c0_6 = arith.constant 0 : index
    %c0_7 = arith.constant 0 : index
    %c0_8 = arith.constant 0 : index
    %c0_9 = arith.constant 0 : index
    %7 = vector.load %arg5[%c0_6, %c0_7, %c0_8, %c0_9] : memref<1x1x1x128xf32, #tpu.memory_space<vmem>>, vector<1x1x1x128xf32>
    %8 = arith.mulf %4, %6 : vector<8x128xf32>
    %cst = arith.constant dense<0.000000e+00> : vector<128xf32>
    %9 = vector.multi_reduction <add>, %8, %cst [0] : vector<8x128xf32> to vector<128xf32>
    %10 = vector.shape_cast %9 : vector<128xf32> to vector<1x128xf32>
    %11 = vector.shape_cast %10 : vector<1x128xf32> to vector<1x1x1x128xf32>
    %12 = arith.addf %7, %11 : vector<1x1x1x128xf32>
    %c0_10 = arith.constant 0 : index
    %c0_11 = arith.constant 0 : index
    %c0_12 = arith.constant 0 : index
    %c0_13 = arith.constant 0 : index
    %13 = vector.load %arg5[%c0_10, %c0_11, %c0_12, %c0_13] : memref<1x1x1x128xf32, #tpu.memory_space<vmem>>, vector<1x1x1x128xf32>
    tpu.vector_store %arg5[%c0_10, %c0_11, %c0_12, %c0_13], %12 {strides = array<i32>} : memref<1x1x1x128xf32, #tpu.memory_space<vmem>>, vector<1x1x1x128xf32>,
    %c0_14 = arith.constant 0 : index
    %c0_15 = arith.constant 0 : index
    %c0_16 = arith.constant 0 : index
    %c0_17 = arith.constant 0 : index
    %14 = vector.load %arg6[%c0_14, %c0_15, %c0_16, %c0_17] : memref<1x1x1x128xf32, #tpu.memory_space<vmem>>, vector<1x1x1x128xf32>
    %15 = arith.addf %4, %6 : vector<8x128xf32>
    %cst_18 = arith.constant dense<0.000000e+00> : vector<128xf32>
    %16 = vector.multi_reduction <add>, %15, %cst_18 [0] : vector<8x128xf32> to vector<128xf32>
    %17 = vector.shape_cast %16 : vector<128xf32> to vector<1x128xf32>
    %18 = vector.shape_cast %17 : vector<1x128xf32> to vector<1x1x1x128xf32>
    %19 = arith.addf %14, %18 : vector<1x1x1x128xf32>
    %c0_19 = arith.constant 0 : index
    %c0_20 = arith.constant 0 : index
    %c0_21 = arith.constant 0 : index
    %c0_22 = arith.constant 0 : index
    %20 = vector.load %arg6[%c0_19, %c0_20, %c0_21, %c0_22] : memref<1x1x1x128xf32, #tpu.memory_space<vmem>>, vector<1x1x1x128xf32>
    tpu.vector_store %arg6[%c0_19, %c0_20, %c0_21, %c0_22], %19 {strides = array<i32>} : memref<1x1x1x128xf32, #tpu.memory_space<vmem>>, vector<1x1x1x128xf32>,
    return
  }
  func.func @transform_0(%arg0: i32, %arg1: i32, %arg2: i32) -> (i32, i32, i32) {
    %c1_i32 = arith.constant 1 : i32
    %0 = arith.muli %arg1, %c1_i32 : i32
    %1 = arith.addi %0, %arg2 : i32
    %c0_i32 = arith.constant 0 : i32
    %c0_i32_0 = arith.constant 0 : i32
    return %arg0, %1, %c0_i32 : i32, i32, i32
  }
  func.func @transform_1(%arg0: i32, %arg1: i32, %arg2: i32) -> (i32, i32, i32) {
    %c1_i32 = arith.constant 1 : i32
    %0 = arith.muli %arg1, %c1_i32 : i32
    %1 = arith.addi %0, %arg2 : i32
    %c0_i32 = arith.constant 0 : i32
    %c0_i32_0 = arith.constant 0 : i32
    return %arg0, %1, %c0_i32 : i32, i32, i32
  }
  func.func @transform_2(%arg0: i32, %arg1: i32, %arg2: i32) -> (i32, i32, i32, i32) {
    %c0_i32 = arith.constant 0 : i32
    %c0_i32_0 = arith.constant 0 : i32
    %c0_i32_1 = arith.constant 0 : i32
    return %arg0, %arg1, %c0_i32, %c0_i32_0 : i32, i32, i32, i32
  }
  func.func @transform_3(%arg0: i32, %arg1: i32, %arg2: i32) -> (i32, i32, i32, i32) {
    %c0_i32 = arith.constant 0 : i32
    %c0_i32_0 = arith.constant 0 : i32
    %c0_i32_1 = arith.constant 0 : i32
    return %arg0, %arg1, %c0_i32, %c0_i32_0 : i32, i32, i32, i32
  }
}

</mosaic_0001>

<bundles_post_ra>
// kernel: tpu_custom_call.1
= control target key start
LH: loop header
LB: loop body
LE: loop exit
PB: predicated region body
PF: predicated region fallthrough
CT: control target
= control target key end

     0   :  { %9 = vsyncpa [#allocation3], 0  ;;  %s1019_s0 = inlined_call_operand.hbm [shape: f32[2,8,128], index: 0, kind: input, shape index: {}]   ;;  %s1020_s1 = inlined_call_operand.hbm [shape: f32[2,8,128], index: 1, kind: input, shape index: {}]   ;;  %s1021_s2 = inlined_call_operand.hbm [shape: f32[2,1,1,128], index: 2, kind: output, shape index: {0}]   ;;  %s1022_s3 = inlined_call_operand.hbm [shape: f32[2,1,1,128], index: 3, kind: output, shape index: {1}]  }
   0x1   :  { %11 = vsyncpa [#allocation3 + $0x1], 0 }
   0x2   :  { %12 = vsyncpa [#allocation6], 0 }
   0x3   :  { %14 = vsyncpa [#allocation6 + $0x1], 0 }
   0x4   :  { %15 = vsyncpa [#allocation4], 0 }
   0x5   :  { %17 = vsyncpa [#allocation4 + $0x1], 0 }
   0x6   :  { %18 = vsyncpa [#allocation9], 0 }
   0x7   :  { %20 = vsyncpa [#allocation9 + $0x1], 0  ;;  %s756_s12 = smov 0   ;;  %s758_s13 = smov 0  }
   0x8   :  { %s760_s14 = smov 0   ;;  %s762_s15 = smov 0  }
   0x9   :  { %s764_s16 = smov 0   ;;  %s766_s17 = smov 0  }
   0xa LB: > { %s463_s18 = sadd.s32 4294967295, %s729_s17   ;;  %s464_s19 = sadd.s32 4294967294, %s729_s17   ;;  %s729_s17 = sphi %s766_s17, %s26_s17   ;;  %s725_s16 = sphi %s764_s16, %s1042_s16   ;;  %s721_s15 = sphi %s762_s15, %s1041_s15   ;;  %s717_s14 = sphi %s760_s14, %s1040_s14   ;;  %s713_s13 = sphi %s758_s13, %s1039_s13   ;;  %s709_s12 = sphi %s756_s12, %s1038_s12  }
   0xb   : > { %s45_s20 = sadd.s32 1, %s725_s16  ;;  %s56_s21 = sadd.s32 1, %s717_s14 }
   0xc   : > { %p47_p0 = scmp.ge.s32.totalorder %s45_s20, 2  ;;  %p63_p1 = scmp.ne.s32.totalorder %s717_s14, %s713_s13 }
   0xd   : > { %p64_p2 = scmp.eq.s32.totalorder %s729_s17, 0  ;;  %p69_p3 = scmp.ne.s32.totalorder %s713_s13, %s709_s12 }
   0xe   : > { %s1044_s20 = smov (%p47_p0, %s45_s20), 0  ;;  %p70_p5 = scmp.eq.s32.totalorder %s463_s18, 0 }
   0xf   : > { %p797_p4 = por %p64_p2, %p63_p1  ;;  %s51_s23 = ssub.s32 %s725_s16, %s1044_s20 }
  0x10   : > { %p125_p6 = scmp.eq.s32.totalorder %s463_s18, 1  ;;  %p54_p7 = scmp.eq.s32.totalorder %s51_s23, 0 }
  0x11   : > { %p803_p8 = por %p70_p5, %p69_p3  ;;  %p131_p10 = scmp.eq.s32.totalorder %s464_s19, 1 }
  0x12   : > { %p807_p9 = por %p125_p6, %p63_p1  ;;  %p500_p13 = scmp.lt.s32.totalorder %s729_s17, 2 }
  0x13   : > { %s1026_s24 = scalar_select %p803_p8, 1, 0 }
  0x14   : > { %s1027_s25 = scalar_select %p807_p9, 1, 0 }
  0x15   : > { %s812_s26 = scalar_select %p54_p7, %s717_s14, %s56_s21  }
  0x16   : > { %p814_p11 = por %p131_p10, %p69_p3  ;;  %s821_s28 = sand.u32 1, %s717_s14  }
  0x17   : > { %s467_s29 = sshll.u32 %s821_s28, 3  ;;  %s468_s30 = sshll.u32 %s725_s16, 7 }
  0x18   : > { %s1028_s27 = scalar_select %p814_p11, 1, 0 }
  0x19   : > { %s830_s6 = scalar_lea.hbm %s1019_s0, %s468_s30  ;;  %s183_s7 = scalar_lea.vmem [#allocation2], %s467_s29 }
  0x1a   : > { %s192_s8 = sshll.u32 %s183_s7, 4  ;;  %p838_p0 = pnand %p500_p13, %p797_p4  ;;  %s834_s8 = int_to_ptr.vmem [resolvable:$true] %s192_s8 }
  0x1b   : > { %s180_s10 = scalar_lea.sflag [#allocation3], %s821_s28  ;;  %s551_s11 = scalar_lea.hbm %s830_s6, 128 }
  0x1c   : > { %p552_p3 = scmp.ne.s32.totalorder %s830_s6, %s551_s11  ;;  %p553_p5 = pneg %p838_p0 }
  0x1d   : > { %s556_s21 = scalar_lea.hbm %s1019_s0, 256  ;;  %p557_p4 = scmp.lt.u32.totalorder %s830_s6, %s1019_s0 }
  0x1e   : > { %p554_p6 = pnand %p553_p5, %p552_p3  ;;  %p558_p10 = scmp.lt.u32.totalorder %s556_s21, %s551_s11 }
  0x1f   : > { %p560_p12 = scmp.lt.u32.totalorder %s551_s11, %s830_s6 }
  0x20   : > { %p555_p7 = pneg %p554_p6  ;;  %p559_p13 = por %p558_p10, %p557_p4 }
  0x22   : > { %p561_p1 = por %p560_p12, %p559_p13 }
  0x24   : > { %p562_p2 = pnand %p561_p1, %p555_p7 }
  0x26   : > { %565 = shalt.err (!%p562_p2)
}
  0x27   : > { %s566_s4 = scalar_lea.vmem %s834_s8, 128  ;;  %s731_s5 = smov [#allocation2]  }
  0x28   : > { %p567_p3 = scmp.ne.s32.totalorder %s834_s8, %s566_s4  ;;  %s571_s7 = sshll.u32 %s731_s5, 4  ;;  %s572_s7 = int_to_ptr.vmem [resolvable:$false] %s571_s7 }
  0x29   : > { %s573_s18 = scalar_lea.vmem %s572_s7, 256  ;;  %p574_p9 = scmp.lt.s32.totalorder %s834_s8, %s572_s7 }
  0x2a   : > { %p569_p6 = pnand %p567_p3, %p553_p5  ;;  %p575_p4 = scmp.lt.s32.totalorder %s573_s18, %s566_s4 }
  0x2c   : > { %p570_p11 = pneg %p569_p6  ;;  %p576_p10 = por %p575_p4, %p574_p9 }
  0x2e   : > { %p577_p12 = pnand %p576_p10, %p570_p11 }
  0x30   : > { %580 = shalt.err (!%p577_p12)
}
  0x31   : > { %489 = dma.hbm_to_vmem [thread:$0]  (!%p838_p0), %s830_s6, 128, %s834_s8, %s180_s10  }
  0x32   : > { %p1030_p1 = scmp.lt.s32.totalorder %s729_s17, 3  ;;  %p1031_p2 = scmp.ge.s32.totalorder %s729_s17, 1 }
  0x33   : > { %s883_s22 = scalar_lea.hbm %s1020_s1, %s468_s30  ;;  %s203_s23 = scalar_lea.vmem [#allocation5], %s467_s29 }
  0x34   : > { %p874_p7 = pnand %p1031_p2, %p1030_p1  ;;  %s212_s4 = sshll.u32 %s203_s23, 4  ;;  %s213_s4 = int_to_ptr.vmem [resolvable:$true] %s212_s4 }
  0x35   : > { %s200_s6 = scalar_lea.sflag [#allocation6], %s821_s28  ;;  %s581_s8 = scalar_lea.hbm %s883_s22, 128 }
  0x36   : > { %s1032_s11 = scalar_select %p874_p7, 1, 0 }
  0x37   : > { %p582_p9 = scmp.ne.s32.totalorder %s883_s22, %s581_s8  ;;  %s586_s30 = scalar_lea.hbm %s1020_s1, 256 }
  0x38   : > { %p587_p3 = scmp.lt.u32.totalorder %s883_s22, %s1020_s1  ;;  %p588_p6 = scmp.lt.u32.totalorder %s586_s30, %s581_s8 }
  0x39   : > { %p584_p11 = pnand %p582_p9, %p553_p5  ;;  %p590_p10 = scmp.lt.u32.totalorder %s581_s8, %s883_s22 }
  0x3a   : > { %p589_p4 = por %p588_p6, %p587_p3 }
  0x3b   : > { %p585_p13 = pneg %p584_p11 }
  0x3c   : > { %p591_p12 = por %p590_p10, %p589_p4 }
  0x3e   : > { %p592_p1 = pnand %p591_p12, %p585_p13 }
  0x40   : > { %595 = shalt.err (!%p592_p1)
}
  0x41   : > { %s596_s28 = scalar_lea.vmem %s213_s4, 128  ;;  %s732_s29 = smov [#allocation5]  }
  0x42   : > { %p597_p2 = scmp.ne.s32.totalorder %s213_s4, %s596_s28  ;;  %s601_s19 = sshll.u32 %s732_s29, 4  ;;  %s602_s19 = int_to_ptr.vmem [resolvable:$false] %s601_s19 }
  0x43   : > { %s603_s21 = scalar_lea.vmem %s602_s19, 256  ;;  %p604_p8 = scmp.lt.s32.totalorder %s213_s4, %s602_s19 }
  0x44   : > { %p599_p9 = pnand %p597_p2, %p553_p5  ;;  %p605_p7 = scmp.lt.s32.totalorder %s603_s21, %s596_s28 }
  0x46   : > { %p600_p11 = pneg %p599_p9  ;;  %p606_p3 = por %p605_p7, %p604_p8 }
  0x48   : > { %p607_p6 = pnand %p606_p3, %p600_p11 }
  0x4a   : > { %610 = shalt.err (!%p607_p6)
}
  0x4b   : > { %492 = dma.hbm_to_vmem [thread:$0]  (!%p838_p0), %s883_s22, 128, %s213_s4, %s200_s6  }
  0x4c   : > { %p1033_p13 = scmp.ne.s32.totalorder %s1032_s11, 0 }
  0x4d   : > { %s910_s23 = sand.u32 (!%p1033_p13), 1, %s713_s13   ;;  %p1034_p5 = scmp.ne.s32.totalorder (!%p1033_p13), %s1026_s24, 0 }
  0x4e   : > { %221 = sbr.rel (%p1033_p13) target bundleno = 142 (0x8e), region = 28  ;;  %s472_s8 = sshll.u32 (!%p1033_p13), %s910_s23, 3 }
  0x4f   : > { %s224_s10 = scalar_lea.sflag (!%p1033_p13), [#allocation3], %s910_s23  ;;  %s227_s5 = scalar_lea.vmem (!%p1033_p13), [#allocation2], %s472_s8 }
  0x55   : > { %692 = dma.done.wait (%p1034_p5), %s224_s10, 128  }
  0x56   : > { %694 = vsyncadd (%p1034_p5), %s224_s10, 4294967168  ;;  %s233_s9 = scalar_lea.sflag [#allocation6], %s910_s23  ;;  %s236_s22 = scalar_lea.vmem [#allocation5], %s472_s8 }
  0x57   : > { %696 = dma.done.wait (%p1034_p5), %s233_s9, 128  }
  0x58   : > { %698 = vsyncadd (%p1034_p5), %s233_s9, 4294967168  ;;  %s924_s11 = scalar_lea.vmem [#allocation7], %s910_s23  ;;  %v733_v0 = vmov 0.0   ;;  %s928_s4 = scalar_lea.vmem [#allocation8], %s910_s23  ;;  %v275_v1 = vld [vmem:[%s227_s5] sm:$0xff]  ;;  %v276_v2 = vld [vmem:[%s236_s22] sm:$0xff] }
  0x59   : > { %273 = vst [vmem:[%s924_s11] sm:$0x1] %v733_v0  ;;  %274 = vst [vmem:[%s928_s4] sm:$0x1] %v733_v0  ;;  %v278_v3 = vmul.f32 %v276_v2, %v275_v1  ;;  %v288_v4 = vadd.f32 %v276_v2, %v275_v1  ;;  %s474_s24 = sshll.u32 %s721_s15, 4  ;;  %s315_s6 = sshll.u32 %s924_s11, 4  ;;  %s941_s6 = int_to_ptr.vmem [resolvable:$true] %s315_s6 }
  0x5a   : > { %s329_s30 = sshll.u32 %s928_s4, 4  ;;  %s939_s28 = scalar_lea.hbm %s1021_s2, %s474_s24  ;;  %s948_s30 = int_to_ptr.vmem [resolvable:$true] %s329_s30 }
  0x5b   : > { %v279_v5 = vrot.slane %v278_v3, 4  ;;  %v289_v6 = vrot.slane %v288_v4, 4  ;;  %s946_s15 = scalar_lea.hbm %s1022_s3, %s474_s24  ;;  %s298_s21 = scalar_lea.sflag [#allocation4], %s910_s23 }
  0x5c   : > { %s611_s8 = scalar_lea.vmem %s941_s6, 16  ;;  %p1035_p0 = scmp.ne.s32.totalorder %s1027_s25, 0 }
  0x5d   : > { %v280_v7 = vadd.f32 %v279_v5, %v278_v3  ;;  %v290_v8 = vadd.f32 %v289_v6, %v288_v4  ;;  %p612_p8 = scmp.ne.s32.totalorder %s941_s6, %s611_s8  ;;  %s734_s10 = smov [#allocation7]  }
  0x5e   : > { %s615_s5 = sshll.u32 %s734_s10, 4  ;;  %s616_s5 = int_to_ptr.vmem [resolvable:$false] %s615_s5 }
  0x5f   : > { %v281_v9 = vrot.slane %v280_v7, 2  ;;  %v291_v10 = vrot.slane %v290_v8, 2  ;;  %p613_p7 = pnand %p612_p8, %p1035_p0  ;;  %s617_s9 = scalar_lea.vmem %s616_s5, 32 }
  0x60   : > { %v277_v15 = vld [vmem:[%s924_s11] sm:$0x1]  ;;  %p618_p10 = scmp.lt.s32.totalorder %s941_s6, %s616_s5  ;;  %p619_p12 = scmp.lt.s32.totalorder %s617_s9, %s611_s8 }
  0x61   : > { %v282_v11 = vadd.f32 %v281_v9, %v280_v7  ;;  %v292_v12 = vadd.f32 %v291_v10, %v290_v8  ;;  %v287_v16 = vld [vmem:[%s928_s4] sm:$0x1]  ;;  %p614_p4 = pneg %p613_p7 }
  0x62   : > { %p620_p1 = por %p619_p12, %p618_p10 }
  0x63   : > { %v283_v13 = vrot.slane %v282_v11, 1  ;;  %v293_v14 = vrot.slane %v292_v12, 1 }
  0x64   : > { %p621_p2 = pnand %p620_p1, %p614_p4 }
  0x65   : > { %v284_v17 = vadd.f32 %v283_v13, %v282_v11  ;;  %v294_v18 = vadd.f32 %v293_v14, %v292_v12 }
  0x67   : > { %v285_v19 = vadd.f32 %v284_v17, %v277_v15  ;;  %v295_v20 = vadd.f32 %v294_v18, %v287_v16 }
  0x69   : > { %286 = vst [vmem:[%s924_s11] sm:$0x1] %v285_v19  ;;  %296 = vst [vmem:[%s928_s4] sm:$0x1] %v295_v20 }
  0x6a   : > { %624 = shalt.err (!%p621_p2)
}
  0x6b   : > { %s625_s22 = scalar_lea.hbm %s939_s28, 16  ;;  %s629_s24 = scalar_lea.hbm %s1021_s2, 32 }
  0x6c   : > { %p626_p9 = scmp.ne.s32.totalorder %s939_s28, %s625_s22  ;;  %p630_p6 = scmp.lt.u32.totalorder %s939_s28, %s1021_s2 }
  0x6d   : > { %p631_p13 = scmp.lt.u32.totalorder %s629_s24, %s625_s22  ;;  %p633_p8 = scmp.lt.u32.totalorder %s625_s22, %s939_s28 }
  0x6e   : > { %p627_p11 = pnand %p626_p9, %p1035_p0 }
  0x6f   : > { %p632_p5 = por %p631_p13, %p630_p6 }
  0x70   : > { %p628_p3 = pneg %p627_p11 }
  0x71   : > { %p634_p7 = por %p633_p8, %p632_p5 }
  0x73   : > { %p635_p4 = pnand %p634_p7, %p628_p3 }
  0x75   : > { %638 = shalt.err (!%p635_p4)
}
  0x76   : > { %482 = dma.vmem_to_hbm [thread:$0]  (%p1035_p0), %s941_s6, 16, %s939_s28, %s298_s21  }
  0x77   : > { %s302_s29 = scalar_lea.sflag [#allocation9], %s910_s23  ;;  %s639_s19 = scalar_lea.vmem %s948_s30, 16 }
  0x78   : > { %p640_p10 = scmp.ne.s32.totalorder %s948_s30, %s639_s19  ;;  %s735_s8 = smov [#allocation8]  }
  0x79   : > { %s643_s10 = sshll.u32 %s735_s8, 4  ;;  %s644_s10 = int_to_ptr.vmem [resolvable:$false] %s643_s10 }
  0x7a   : > { %p641_p12 = pnand %p640_p10, %p1035_p0  ;;  %s645_s5 = scalar_lea.vmem %s644_s10, 32 }
  0x7b   : > { %p646_p2 = scmp.lt.s32.totalorder %s948_s30, %s644_s10  ;;  %p647_p9 = scmp.lt.s32.totalorder %s645_s5, %s639_s19 }
  0x7c   : > { %p642_p1 = pneg %p641_p12 }
  0x7d   : > { %p648_p11 = por %p647_p9, %p646_p2 }
  0x7f   : > { %p649_p3 = pnand %p648_p11, %p642_p1 }
  0x81   : > { %652 = shalt.err (!%p649_p3)
}
  0x82   : > { %s653_s23 = scalar_lea.hbm %s946_s15, 16  ;;  %s657_s21 = scalar_lea.hbm %s1022_s3, 32 }
  0x83   : > { %p654_p6 = scmp.ne.s32.totalorder %s946_s15, %s653_s23  ;;  %p658_p8 = scmp.lt.u32.totalorder %s946_s15, %s1022_s3 }
  0x84   : > { %p659_p7 = scmp.lt.u32.totalorder %s657_s21, %s653_s23  ;;  %p661_p10 = scmp.lt.u32.totalorder %s653_s23, %s946_s15 }
  0x85   : > { %p655_p13 = pnand %p654_p6, %p1035_p0 }
  0x86   : > { %p660_p4 = por %p659_p7, %p658_p8 }
  0x87   : > { %p656_p5 = pneg %p655_p13 }
  0x88   : > { %p662_p12 = por %p661_p10, %p660_p4 }
  0x8a   : > { %p663_p1 = pnand %p662_p12, %p656_p5 }
  0x8c   : > { %666 = shalt.err (!%p663_p1)
}
  0x8d   : > { %483 = dma.vmem_to_hbm [thread:$0]  (%p1035_p0), %s948_s30, 16, %s946_s15, %s302_s29  }
  0x8e PF: > { %s341_s11 = sand.u32 1, %s709_s12   ;;  %p1036_p2 = scmp.ne.s32.totalorder %s1028_s27, 0 }
  0x8f   : > { %p1037_p9 = scmp.ge.s32.totalorder %s729_s17, 2  ;;  %s342_s4 = scalar_lea.sflag [#allocation4], %s341_s11 }
  0x91   : > { %p494_p11 = pnand %p1037_p9, %p1036_p2 }
  0x93   : > { %700 = dma.done.wait (!%p494_p11), %s342_s4, 16  }
  0x94   : > { %702 = vsyncadd (!%p494_p11), %s342_s4, 4294967280  ;;  %s350_s24 = scalar_lea.sflag [#allocation9], %s341_s11 }
  0x95   : > { %704 = dma.done.wait (!%p494_p11), %s350_s24, 16  }
  0x96   : > { %706 = vsyncadd (!%p494_p11), %s350_s24, 4294967280  ;;  %s26_s17 = sadd.s32 1, %s729_s17   ;;  %s1038_s12 = smov %s713_s13 }
  0x97   : > { %p23_p3 = scmp.ge.s32.totalorder %s26_s17, 4   ;;  %s1039_s13 = smov %s717_s14 }
  0x98   : > { %s1040_s14 = smov %s812_s26  ;;  %s1041_s15 = smov %s725_s16 }
  0x99   : > { %s1042_s16 = smov %s1044_s20  ;;  %25 = sbr.rel (!%p23_p3) target bundleno = 10 (0xa), region = 107 }
  0xa0   :  { %354 = vsyncpa [#allocation3], 1 }
  0xa1   :  { %356 = vsyncpa [#allocation3 + $0x1], 1 }
  0xa2   :  { %357 = vsyncpa [#allocation6], 1 }
  0xa3   :  { %359 = vsyncpa [#allocation6 + $0x1], 1 }
  0xa4   :  { %360 = vsyncpa [#allocation4], 1 }
  0xa5   :  { %362 = vsyncpa [#allocation4 + $0x1], 1 }
  0xa6   :  { %363 = vsyncpa [#allocation9], 1 }
  0xa7   :  { %365 = vsyncpa [#allocation9 + $0x1], 1 }

</bundles_post_ra>
